<compile_context>
chip_gen: v5e
topology: v5e:2x2
jax: 0.10.0
libtpu: 0.0.40
codegen_flags: <defaults>
</compile_context>

<pallas_src>
import functools

import jax
import jax.numpy as jnp
from jax.experimental import pallas as pl
from jax.experimental.pallas import tpu as pltpu


def _logcumsumexp_kernel(x_ref, o_ref, scratch_ref, *, scale):
    """Scaled, numerically-stable logcumsumexp along the last (lane) dim.

    x_ref:       (rows, n) input block
    o_ref:       (rows, n) output block (input dtype)
    scratch_ref: (rows, 2*n) fp32 VMEM; lanes [0, n) stay zero and provide the
                 zero fill for the prefix-sum shifts, lanes [n, 2n) hold the
                 current accumulator.
    """
    n = x_ref.shape[-1]
    x = x_ref[...].astype(jnp.float32)

    # Stable log-cum-sum-exp: subtract the per-row max before exponentiating.
    m = jnp.max(x, axis=-1, keepdims=True)
    e = jnp.exp(x - m)

    # Inclusive prefix sum along lanes (Hillis-Steele, ceil(log2(n)) steps).
    # Each shifted operand is read back from the zero-padded scratch with a
    # static slice, so shift direction / fill semantics are exact.
    scratch_ref[:, :n] = jnp.zeros_like(e)
    acc = e
    shift = 1
    while shift < n:                      # static Python loop, unrolled
        scratch_ref[:, n:] = acc
        acc = acc + scratch_ref[:, n - shift:2 * n - shift]
        shift *= 2

    o_ref[...] = ((jnp.log(acc) + m) * scale).astype(o_ref.dtype)


def _choose_block_rows(total_rows, row_len, io_itemsize):
    """Pick a row-block size that stays inside a conservative VMEM budget."""
    # Per block element: double-buffered input + output (io dtype), the fp32
    # scratch (2*row_len wide -> 8 B per row element) and ~4 fp32 temporaries
    # Mosaic materializes for traced intermediates.
    bytes_per_elem = 2 * io_itemsize + 2 * io_itemsize + 8 + 16
    budget = 12 * 1024 * 1024           # fits every generation's default limit
    rows = budget // max(1, bytes_per_elem * row_len)
    rows = (int(rows) // 8) * 8         # sublane multiple
    rows = max(8, min(rows, 2048))
    if total_rows <= rows:
        return total_rows               # full-extent block (always legal)
    return rows


class CumsumExpPallas:
    """Pallas port of cramming's CumsumExp sequence op."""

    def __init__(self, seq_op_in_fp32=True):
        # The PyTorch module ignores the constructor argument and always
        # computes in fp32; mirror that.
        self.seq_op_in_fp32 = True

    def __call__(self, inputs, attention_mask=None):
        # `attention_mask` is part of the reference signature but unused by
        # the reference forward, so it is accepted and ignored here too.
        del attention_mask
        assert inputs.ndim >= 3, "reference indexes inputs.shape[2]"
        input_dtype = inputs.dtype
        scale = float(inputs.shape[2]) ** -0.5

        orig_shape = inputs.shape
        row_len = int(orig_shape[-1])
        total_rows = 1
        for d in orig_shape[:-1]:
            total_rows *= int(d)
        x = inputs.reshape(total_rows, row_len)     # free reshape (contiguous)

        rows = _choose_block_rows(total_rows, row_len, input_dtype.itemsize)
        grid = (pl.cdiv(total_rows, rows),)
        blk = pl.BlockSpec((rows, row_len), lambda i: (i, 0))

        n_elems = total_rows * row_len
        scan_steps = (row_len - 1).bit_length() if row_len > 1 else 1
        cost = pl.CostEstimate(
            flops=int(n_elems * (2 * scan_steps + 4)),
            transcendentals=int(2 * n_elems),
            bytes_accessed=int(2 * n_elems * input_dtype.itemsize),
        )

        out = pl.pallas_call(
            functools.partial(_logcumsumexp_kernel, scale=scale),
            out_shape=jax.ShapeDtypeStruct((total_rows, row_len), input_dtype),
            grid_spec=pltpu.PrefetchScalarGridSpec(
                num_scalar_prefetch=0,
                grid=grid,
                in_specs=[blk],
                out_specs=blk,
                scratch_shapes=[pltpu.VMEM((rows, 2 * row_len), jnp.float32)],
            ),
            compiler_params=pltpu.CompilerParams(
                dimension_semantics=("parallel",),
                vmem_limit_bytes=32 * 1024 * 1024,
            ),
            cost_estimate=cost,
        )(x)
        return out.reshape(orig_shape)


if __name__ == "__main__":
    key = jax.random.PRNGKey(0)
    B, H, S = 2, 4, 16
    k1, k2 = jax.random.split(key)
    inputs = jax.random.normal(k1, (B, H, S, S), dtype=jnp.float32)
    # mask is accepted for API parity; the reference forward never uses it
    attention_mask = (jax.random.uniform(k2, (B, 1, 1, S)) > 0.5).astype(jnp.float32)

    module = CumsumExpPallas(seq_op_in_fp32=True)
    out = module(inputs, attention_mask)
    jax.block_until_ready(out)

    # plain-JAX reference: stable logcumsumexp along dim -1, scaled, recast
    def ref_fn(x):
        x32 = x.astype(jnp.float32)
        m = jnp.max(x32, axis=-1, keepdims=True)
        lcse = jnp.log(jnp.cumsum(jnp.exp(x32 - m), axis=-1)) + m
        return (lcse * (x.shape[2] ** -0.5)).astype(x.dtype)

    ref = ref_fn(inputs)
    assert out.shape == inputs.shape and out.dtype == inputs.dtype
    assert jnp.allclose(out, ref, atol=1e-4, rtol=1e-4)

    # bf16 path exercises the in-kernel fp32 upcast and the cast back to bf16
    x_bf16 = inputs.astype(jnp.bfloat16)
    out_bf16 = module(x_bf16)
    jax.block_until_ready(out_bf16)
    ref_bf16 = ref_fn(x_bf16)
    assert out_bf16.dtype == jnp.bfloat16
    assert jnp.allclose(out_bf16.astype(jnp.float32),
                        ref_bf16.astype(jnp.float32), atol=2e-2, rtol=2e-2)

    print("KERNEL_OK")
</pallas_src>

<mosaic_0001>
module attributes {stable_mosaic.version = 11 : i64} {
  func.func @_logcumsumexp_kernel(%arg0: i32, %arg1: memref<128x16xf32, #tpu.memory_space<vmem>>, %arg2: memref<128x16xf32, #tpu.memory_space<vmem>>, %arg3: memref<128x32xf32, #tpu.memory_space<vmem>>) attributes {dimension_semantics = [#tpu.dimension_semantics<parallel>], iteration_bounds = array<i64: 1>, scalar_prefetch = 0 : i64, scratch_operands = 1 : i64, tpu.core_type = #tpu.core_type<tc>, window_params = [{transform_indices = @transform_0, window_bounds = array<i64: 128, 16>}, {transform_indices = @transform_1, window_bounds = array<i64: 128, 16>}]} {
    %c0 = arith.constant 0 : index
    %c0_0 = arith.constant 0 : index
    %0 = vector.load %arg1[%c0, %c0_0] : memref<128x16xf32, #tpu.memory_space<vmem>>, vector<128x16xf32>
    %cst = arith.constant dense<0xFF800000> : vector<128xf32>
    %1 = vector.multi_reduction <maximumf>, %0, %cst [1] : vector<128x16xf32> to vector<128xf32>
    %2 = vector.shape_cast %1 : vector<128xf32> to vector<128x1xf32>
    %3 = vector.broadcast %2 : vector<128x1xf32> to vector<128x16xf32>
    %4 = arith.subf %0, %3 : vector<128x16xf32>
    %5 = math.exp %4 : vector<128x16xf32>
    %cst_1 = arith.constant 0.000000e+00 : f32
    %6 = vector.broadcast %cst_1 : f32 to vector<128x16xf32>
    %c0_2 = arith.constant 0 : index
    %c0_3 = arith.constant 0 : index
    %7 = vector.load %arg3[%c0_2, %c0_3] : memref<128x32xf32, #tpu.memory_space<vmem>>, vector<128x16xf32>
    tpu.vector_store %arg3[%c0_2, %c0_3], %6 {strides = array<i32>} : memref<128x32xf32, #tpu.memory_space<vmem>>, vector<128x16xf32>,
    %c0_4 = arith.constant 0 : index
    %c16 = arith.constant 16 : index
    %8 = vector.load %arg3[%c0_4, %c16] : memref<128x32xf32, #tpu.memory_space<vmem>>, vector<128x16xf32>
    tpu.vector_store %arg3[%c0_4, %c16], %5 {strides = array<i32>} : memref<128x32xf32, #tpu.memory_space<vmem>>, vector<128x16xf32>,
    %c0_5 = arith.constant 0 : index
    %c15 = arith.constant 15 : index
    %9 = vector.load %arg3[%c0_5, %c15] : memref<128x32xf32, #tpu.memory_space<vmem>>, vector<128x16xf32>
    %10 = arith.addf %5, %9 : vector<128x16xf32>
    %c0_6 = arith.constant 0 : index
    %c16_7 = arith.constant 16 : index
    %11 = vector.load %arg3[%c0_6, %c16_7] : memref<128x32xf32, #tpu.memory_space<vmem>>, vector<128x16xf32>
    tpu.vector_store %arg3[%c0_6, %c16_7], %10 {strides = array<i32>} : memref<128x32xf32, #tpu.memory_space<vmem>>, vector<128x16xf32>,
    %c0_8 = arith.constant 0 : index
    %c14 = arith.constant 14 : index
    %12 = vector.load %arg3[%c0_8, %c14] : memref<128x32xf32, #tpu.memory_space<vmem>>, vector<128x16xf32>
    %13 = arith.addf %10, %12 : vector<128x16xf32>
    %c0_9 = arith.constant 0 : index
    %c16_10 = arith.constant 16 : index
    %14 = vector.load %arg3[%c0_9, %c16_10] : memref<128x32xf32, #tpu.memory_space<vmem>>, vector<128x16xf32>
    tpu.vector_store %arg3[%c0_9, %c16_10], %13 {strides = array<i32>} : memref<128x32xf32, #tpu.memory_space<vmem>>, vector<128x16xf32>,
    %c0_11 = arith.constant 0 : index
    %c12 = arith.constant 12 : index
    %15 = vector.load %arg3[%c0_11, %c12] : memref<128x32xf32, #tpu.memory_space<vmem>>, vector<128x16xf32>
    %16 = arith.addf %13, %15 : vector<128x16xf32>
    %c0_12 = arith.constant 0 : index
    %c16_13 = arith.constant 16 : index
    %17 = vector.load %arg3[%c0_12, %c16_13] : memref<128x32xf32, #tpu.memory_space<vmem>>, vector<128x16xf32>
    tpu.vector_store %arg3[%c0_12, %c16_13], %16 {strides = array<i32>} : memref<128x32xf32, #tpu.memory_space<vmem>>, vector<128x16xf32>,
    %c0_14 = arith.constant 0 : index
    %c8 = arith.constant 8 : index
    %18 = vector.load %arg3[%c0_14, %c8] : memref<128x32xf32, #tpu.memory_space<vmem>>, vector<128x16xf32>
    %19 = arith.addf %16, %18 : vector<128x16xf32>
    %20 = math.log %19 : vector<128x16xf32>
    %21 = vector.broadcast %2 : vector<128x1xf32> to vector<128x16xf32>
    %22 = arith.addf %20, %21 : vector<128x16xf32>
    %cst_15 = arith.constant 2.500000e-01 : f32
    %23 = vector.broadcast %cst_15 : f32 to vector<128x16xf32>
    %24 = arith.mulf %22, %23 : vector<128x16xf32>
    %c0_16 = arith.constant 0 : index
    %c0_17 = arith.constant 0 : index
    %25 = vector.load %arg2[%c0_16, %c0_17] : memref<128x16xf32, #tpu.memory_space<vmem>>, vector<128x16xf32>
    tpu.vector_store %arg2[%c0_16, %c0_17], %24 {strides = array<i32>} : memref<128x16xf32, #tpu.memory_space<vmem>>, vector<128x16xf32>,
    return
  }
  func.func @transform_0(%arg0: i32) -> (i32, i32) {
    %c0_i32 = arith.constant 0 : i32
    %c0_i32_0 = arith.constant 0 : i32
    return %arg0, %c0_i32 : i32, i32
  }
  func.func @transform_1(%arg0: i32) -> (i32, i32) {
    %c0_i32 = arith.constant 0 : i32
    %c0_i32_0 = arith.constant 0 : i32
    return %arg0, %c0_i32 : i32, i32
  }
}

</mosaic_0001>

<bundles_post_ra>
// kernel: tpu_custom_call.1
= control target key start
LH: loop header
LB: loop body
LE: loop exit
PB: predicated region body
PF: predicated region fallthrough
CT: control target
= control target key end

     0   :  { %vm24_vm0 = vcmask 130048   ;;  %vm201_vm1 = vcmask 261248   ;;  %s998_s9 = smov 113   ;;  %s999_s10 = smov 114   ;;  %s1712_s0 = inlined_call_operand.vmem [shape: f32[128,16], index: 0, kind: input, shape index: {}]   ;;  %s1713_s1 = inlined_call_operand.vmem [shape: f32[128,16], index: 1, kind: output, shape index: {}]  }
   0x1   :  { %v12_v0 = vld [vmem:[%s1712_s0 + $0x20] sm:$0xff]  ;;  %v10_v1 = vld [vmem:[%s1712_s0 + $0x10] sm:$0xff]  ;;  %v13_v6 = vld [vmem:[%s1712_s0 + $0x28] sm:$0xff]  ;;  %s1000_s11 = smov 116   ;;  %s1001_s12 = smov 120  }
   0x2   :  { %v8_v2 = vld [vmem:[%s1712_s0] sm:$0xff]  ;;  %v37_v3 = vsel %vm24_vm0, %v12_v0, -inf  ;;  %v31_v4 = vsel %vm24_vm0, %v10_v1, -inf  ;;  %v1030_v7 = vld [vmem:[%s1712_s0 + $0x18] sm:$0xff]  ;;  %v9_v8 = vld [vmem:[%s1712_s0 + $0x8] sm:$0xff]  ;;  %v40_v9 = vsel %vm24_vm0, %v13_v6, -inf }
   0x3   :  { %v25_v5 = vsel %vm24_vm0, %v8_v2, -inf  ;;  %38 = vmax.xlane.f32.xlu2 %v37_v3  ;;  %32 = vmax.xlane.f32.xlu1 %v31_v4  ;;  %v34_v10 = vsel %vm24_vm0, %v1030_v7, -inf  ;;  %v28_v11 = vsel %vm24_vm0, %v9_v8, -inf  ;;  %v1042_v12 = vld [vmem:[%s1712_s0 + $0x40] sm:$0xff]  ;;  %v1047_v13 = vld [vmem:[%s1712_s0 + $0x38] sm:$0xff]  ;;  %v1052_v14 = vld [vmem:[%s1712_s0 + $0x30] sm:$0xff] }
   0x4   :  { %26 = vmax.xlane.f32.xlu0 %v25_v5  ;;  %v49_v15 = vsel %vm24_vm0, %v1042_v12, -inf  ;;  %v46_v16 = vsel %vm24_vm0, %v1047_v13, -inf  ;;  %v43_v17 = vsel %vm24_vm0, %v1052_v14, -inf  ;;  %v1063_v18 = vld [vmem:[%s1712_s0 + $0x58] sm:$0xff]  ;;  %v1068_v19 = vld [vmem:[%s1712_s0 + $0x50] sm:$0xff]  ;;  %v1073_v20 = vld [vmem:[%s1712_s0 + $0x48] sm:$0xff] }
   0x5   :  { %v58_v21 = vsel %vm24_vm0, %v1063_v18, -inf  ;;  %v55_v22 = vsel %vm24_vm0, %v1068_v19, -inf  ;;  %v52_v23 = vsel %vm24_vm0, %v1073_v20, -inf  ;;  %v1084_v24 = vld [vmem:[%s1712_s0 + $0x70] sm:$0xff]  ;;  %v1089_v25 = vld [vmem:[%s1712_s0 + $0x68] sm:$0xff]  ;;  %v1094_v26 = vld [vmem:[%s1712_s0 + $0x60] sm:$0xff] }
   0x6   :  { %v67_v27 = vsel %vm24_vm0, %v1084_v24, -inf  ;;  %v64_v28 = vsel %vm24_vm0, %v1089_v25, -inf  ;;  %v61_v29 = vsel %vm24_vm0, %v1094_v26, -inf  ;;  %v1105_v30 = vld [vmem:[%s1712_s0 + $0x78] sm:$0xff]  ;;  %s996_s0 = smov 16  }
   0x7   :  { %v70_v31 = vsel %vm24_vm0, %v1105_v30, -inf }
   0xb   :  { %41 = vmax.xlane.f32.xlu2 %v40_v9  ;;  %35 = vmax.xlane.f32.xlu1 %v34_v10 }
   0xc   :  { %29 = vmax.xlane.f32.xlu0 %v28_v11  ;;  %v997_v11 = vmov 0.0  }
   0xd   :  { %122 = vst.msk [vmem:[#allocation2 + $0x8] sm:$0xff] %vm24_vm0, %v997_v11 }
   0xe   :  { %121 = vst.msk [vmem:[#allocation2] sm:$0xff] %vm24_vm0, %v997_v11 }
   0xf   :  { %123 = vst.msk [vmem:[#allocation2 + $0x10] sm:$0xff] %vm24_vm0, %v997_v11 }
  0x10   :  { %124 = vst.msk [vmem:[#allocation2 + $0x18] sm:$0xff] %vm24_vm0, %v997_v11 }
  0x11   :  { %125 = vst.msk [vmem:[#allocation2 + $0x20] sm:$0xff] %vm24_vm0, %v997_v11 }
  0x12   :  { %126 = vst.msk [vmem:[#allocation2 + $0x28] sm:$0xff] %vm24_vm0, %v997_v11 }
  0x13   :  { %50 = vmax.xlane.f32.xlu2 %v49_v15  ;;  %47 = vmax.xlane.f32.xlu1 %v46_v16  ;;  %127 = vst.msk [vmem:[#allocation2 + $0x30] sm:$0xff] %vm24_vm0, %v997_v11 }
  0x14   :  { %44 = vmax.xlane.f32.xlu0 %v43_v17  ;;  %128 = vst.msk [vmem:[#allocation2 + $0x38] sm:$0xff] %vm24_vm0, %v997_v11 }
  0x15   :  { %129 = vst.msk [vmem:[#allocation2 + $0x40] sm:$0xff] %vm24_vm0, %v997_v11 }
  0x16   :  { %130 = vst.msk [vmem:[#allocation2 + $0x48] sm:$0xff] %vm24_vm0, %v997_v11 }
  0x17   :  { %131 = vst.msk [vmem:[#allocation2 + $0x50] sm:$0xff] %vm24_vm0, %v997_v11 }
  0x18   :  { %132 = vst.msk [vmem:[#allocation2 + $0x58] sm:$0xff] %vm24_vm0, %v997_v11 }
  0x19   :  { %133 = vst.msk [vmem:[#allocation2 + $0x60] sm:$0xff] %vm24_vm0, %v997_v11 }
  0x1a   :  { %134 = vst.msk [vmem:[#allocation2 + $0x68] sm:$0xff] %vm24_vm0, %v997_v11 }
  0x1b   :  { %59 = vmax.xlane.f32.xlu2 %v58_v21  ;;  %56 = vmax.xlane.f32.xlu1 %v55_v22  ;;  %135 = vst.msk [vmem:[#allocation2 + $0x70] sm:$0xff] %vm24_vm0, %v997_v11 }
  0x1c   :  { %53 = vmax.xlane.f32.xlu0 %v52_v23  ;;  %136 = vst.msk [vmem:[#allocation2 + $0x78] sm:$0xff] %vm24_vm0, %v997_v11 }
  0x23   :  { %68 = vmax.xlane.f32.xlu2 %v67_v27  ;;  %65 = vmax.xlane.f32.xlu1 %v64_v28 }
  0x24   :  { %62 = vmax.xlane.f32.xlu0 %v61_v29 }
  0x2c   :  { %71 = vmax.xlane.f32.xlu0 %v70_v31 }
  0x76   :  { %v1109_v32 = vpop.xlane.xlu2 %38  ;;  %v1111_v33 = vpop.xlane.xlu1 %32 }
  0x77   :  { %v75_v34 = vsub.f32 %v10_v1, %v1111_v33  ;;  %v1114_v35 = vpop.xlane.xlu0 %26  ;;  %v77_v38 = vsub.f32 %v12_v0, %v1109_v32 }
  0x78   :  { %v73_v36 = vsub.f32 %v8_v2, %v1114_v35 }
  0x79   :  { %v93_v37 = vmul.f32 1.442695, %v75_v34  ;;  %v97_v40 = vmul.f32 1.442695, %v77_v38 }
  0x7a   :  { %v89_v39 = vmul.f32 1.442695, %v73_v36 }
  0x7b   :  { %932 = vpow2.f32 %v93_v37 }
  0x7c   :  { %934 = vpow2.f32 %v89_v39 }
  0x7d   :  { %936 = vpow2.f32 %v97_v40 }
  0x7e   :  { %v1118_v41 = vpop.xlane.xlu2 %41  ;;  %v1120_v42 = vpop.xlane.xlu1 %35 }
  0x7f   :  { %v78_v43 = vsub.f32 %v13_v6, %v1118_v41  ;;  %v1123_v44 = vpop.xlane.xlu0 %29  ;;  %v76_v48 = vsub.f32 %v1030_v7, %v1120_v42 }
  0x80   :  { %v74_v45 = vsub.f32 %v9_v8, %v1123_v44 }
  0x81   :  { %v99_v46 = vmul.f32 1.442695, %v78_v43  ;;  %v1126_v47 = vpop.eup %932  ;;  %v95_v51 = vmul.f32 1.442695, %v76_v48 }
  0x82   :  { %v91_v49 = vmul.f32 1.442695, %v74_v45  ;;  %v1130_v50 = vpop.eup %934  ;;  %157 = vrot.lane.b32.xlu0 %v1126_v47, %s996_s0 }
  0x83   :  { %938 = vpow2.f32 %v99_v46  ;;  %153 = vrot.lane.b32.xlu1 %v1130_v50, %s996_s0  ;;  %v1146_v57 = vpop.eup %936 }
  0x84   :  { %940 = vpow2.f32 %v91_v49 }
  0x85   :  { %942 = vpow2.f32 %v95_v51 }
  0x86   :  { %v1136_v52 = vpop.xlane.xlu2 %50  ;;  %v1138_v53 = vpop.xlane.xlu1 %47 }
  0x87   :  { %v81_v54 = vsub.f32 %v1042_v12, %v1136_v52  ;;  %v80_v55 = vsub.f32 %v1047_v13, %v1138_v53  ;;  %v1144_v56 = vpop.xlane.xlu0 %44 }
  0x88   :  { %v79_v61 = vsub.f32 %v1052_v14, %v1144_v56 }
  0x89   :  { %v1148_v58 = vpop.eup %938  ;;  %v105_v59 = vmul.f32 1.442695, %v81_v54  ;;  %v103_v60 = vmul.f32 1.442695, %v80_v55 }
  0x8a   :  { %v1152_v62 = vpop.eup %940  ;;  %163 = vrot.lane.b32.xlu0 %v1148_v58, %s996_s0  ;;  %v101_v1 = vmul.f32 1.442695, %v79_v61 }
  0x8b   :  { %944 = vpow2.f32 %v105_v59  ;;  %161 = vrot.lane.b32.xlu1 %v1146_v57, %s996_s0  ;;  %155 = vrot.lane.b32.xlu2 %v1152_v62, %s996_s0  ;;  %v1170_v5 = vpop.eup %942 }
  0x8c   :  { %946 = vpow2.f32 %v103_v60 }
  0x8d   :  { %948 = vpow2.f32 %v101_v1 }
  0x8e   :  { %v1160_v63 = vpop.xlane.xlu2 %59  ;;  %v1162_v0 = vpop.xlane.xlu1 %56 }
  0x8f   :  { %v84_v2 = vsub.f32 %v1063_v18, %v1160_v63  ;;  %v83_v3 = vsub.f32 %v1068_v19, %v1162_v0  ;;  %v1168_v4 = vpop.xlane.xlu0 %53 }
  0x90   :  { %v82_v10 = vsub.f32 %v1073_v20, %v1168_v4 }
  0x91   :  { %v1172_v6 = vpop.eup %944  ;;  %v111_v7 = vmul.f32 1.442695, %v84_v2  ;;  %v109_v8 = vmul.f32 1.442695, %v83_v3 }
  0x92   :  { %v1174_v9 = vpop.eup %946  ;;  %169 = vrot.lane.b32.xlu0 %v1172_v6, %s996_s0  ;;  %v107_v14 = vmul.f32 1.442695, %v82_v10 }
  0x93   :  { %950 = vpow2.f32 %v111_v7  ;;  %167 = vrot.lane.b32.xlu1 %v1174_v9, %s996_s0  ;;  %159 = vrot.lane.b32.xlu2 %v1170_v5, %s996_s0  ;;  %v1197_v18 = vpop.eup %948 }
  0x94   :  { %952 = vpow2.f32 %v109_v8 }
  0x95   :  { %954 = vpow2.f32 %v107_v14 }
  0x96   :  { %v1185_v12 = vpop.xlane.xlu2 %68  ;;  %v1187_v13 = vpop.xlane.xlu1 %65 }
  0x97   :  { %v87_v15 = vsub.f32 %v1084_v24, %v1185_v12  ;;  %v86_v16 = vsub.f32 %v1089_v25, %v1187_v13  ;;  %v1194_v17 = vpop.xlane.xlu0 %62 }
  0x98   :  { %v85_v23 = vsub.f32 %v1094_v26, %v1194_v17 }
  0x99   :  { %v1200_v19 = vpop.eup %950  ;;  %v117_v20 = vmul.f32 1.442695, %v87_v15  ;;  %v115_v21 = vmul.f32 1.442695, %v86_v16 }
  0x9a   :  { %v1203_v22 = vpop.eup %952  ;;  %175 = vrot.lane.b32.xlu0 %v1200_v19, %s996_s0  ;;  %v113_v24 = vmul.f32 1.442695, %v85_v23 }
  0x9b   :  { %956 = vpow2.f32 %v117_v20  ;;  %173 = vrot.lane.b32.xlu1 %v1203_v22, %s996_s0  ;;  %165 = vrot.lane.b32.xlu2 %v1197_v18, %s996_s0  ;;  %v1219_v25 = vpop.eup %954 }
  0x9c   :  { %958 = vpow2.f32 %v115_v21 }
  0x9d   :  { %960 = vpow2.f32 %v113_v24 }
  0x9f   :  { %v1221_v26 = vpop.xlane.xlu0 %71 }
  0xa0   :  { %v88_v29 = vsub.f32 %v1105_v30, %v1221_v26 }
  0xa1   :  { %v1224_v27 = vpop.eup %956 }
  0xa2   :  { %v1227_v28 = vpop.eup %958  ;;  %181 = vrot.lane.b32.xlu0 %v1224_v27, %s996_s0  ;;  %v119_v31 = vmul.f32 1.442695, %v88_v29 }
  0xa3   :  { %179 = vrot.lane.b32.xlu1 %v1227_v28, %s996_s0  ;;  %171 = vrot.lane.b32.xlu2 %v1219_v25, %s996_s0  ;;  %v1240_v34 = vpop.eup %960 }
  0xa4   :  { %962 = vpow2.f32 %v119_v31 }
  0xaa   :  { %v1244_v36 = vpop.eup %962 }
  0xab   :  { %177 = vrot.lane.b32.xlu2 %v1240_v34, %s996_s0 }
  0xb3   :  { %183 = vrot.lane.b32.xlu2 %v1244_v36, %s996_s0 }
  0xe5   :  { %v156_v30 = vpop.permute.xlu2 %155 }
  0xe6   :  { %203 = vst.msk [vmem:[#allocation2 + $0x8] sm:$0xff] %vm201_vm1, %v156_v30 }
  0xed   :  { %v160_v37 = vpop.permute.xlu2 %159  ;;  %v219_v38 = vld [vmem:[#allocation2 + $0x8] sm:$0xff] }
  0xee   :  { %205 = vst.msk [vmem:[#allocation2 + $0x18] sm:$0xff] %vm201_vm1, %v160_v37  ;;  %252 = vrot.lane.b32.xlu0 %v219_v38, %s998_s9 }
  0xf4   :  { %v158_v39 = vpop.permute.xlu0 %157 }
  0xf5   :  { %v154_v40 = vpop.permute.xlu1 %153  ;;  %204 = vst.msk [vmem:[#allocation2 + $0x10] sm:$0xff] %vm201_vm1, %v158_v39  ;;  %v166_v43 = vpop.permute.xlu2 %165  ;;  %v221_v61 = vld [vmem:[#allocation2 + $0x18] sm:$0xff] }
  0xf6   :  { %202 = vst.msk [vmem:[#allocation2] sm:$0xff] %vm201_vm1, %v154_v40 }
  0xf7   :  { %208 = vst.msk [vmem:[#allocation2 + $0x30] sm:$0xff] %vm201_vm1, %v166_v43 }
  0xfc   :  { %v164_v45 = vpop.permute.xlu0 %163  ;;  %v220_v46 = vld [vmem:[#allocation2 + $0x10] sm:$0xff] }
  0xfd   :  { %v162_v48 = vpop.permute.xlu1 %161  ;;  %207 = vst.msk [vmem:[#allocation2 + $0x28] sm:$0xff] %vm201_vm1, %v164_v45  ;;  %v218_v49 = vld [vmem:[#allocation2] sm:$0xff]  ;;  %254 = vrot.lane.b32.xlu2 %v220_v46, %s998_s9  ;;  %v172_v51 = vpop.permute.xlu2 %171 }
  0xfe   :  { %206 = vst.msk [vmem:[#allocation2 + $0x20] sm:$0xff] %vm201_vm1, %v162_v48  ;;  %250 = vrot.lane.b32.xlu1 %v218_v49, %s998_s9  ;;  %v224_v2 = vld [vmem:[#allocation2 + $0x30] sm:$0xff] }
  0xff   :  { %211 = vst.msk [vmem:[#allocation2 + $0x48] sm:$0xff] %vm201_vm1, %v172_v51 }
 0x104   :  { %v170_v54 = vpop.permute.xlu0 %169  ;;  %v223_v55 = vld [vmem:[#allocation2 + $0x28] sm:$0xff] }
 0x105   :  { %v168_v59 = vpop.permute.xlu1 %167  ;;  %210 = vst.msk [vmem:[#allocation2 + $0x40] sm:$0xff] %vm201_vm1, %v170_v54  ;;  %v222_v60 = vld [vmem:[#allocation2 + $0x20] sm:$0xff]  ;;  %260 = vrot.lane.b32.xlu2 %v223_v55, %s998_s9  ;;  %v178_v1 = vpop.permute.xlu2 %177 }
 0x106   :  { %209 = vst.msk [vmem:[#allocation2 + $0x38] sm:$0xff] %vm201_vm1, %v168_v59  ;;  %258 = vrot.lane.b32.xlu0 %v222_v60, %s998_s9  ;;  %256 = vrot.lane.b32.xlu1 %v221_v61, %s998_s9  ;;  %v227_v14 = vld [vmem:[#allocation2 + $0x48] sm:$0xff] }
 0x107   :  { %214 = vst.msk [vmem:[#allocation2 + $0x60] sm:$0xff] %vm201_vm1, %v178_v1 }
 0x10c   :  { %v176_v3 = vpop.permute.xlu0 %175  ;;  %v226_v7 = vld [vmem:[#allocation2 + $0x40] sm:$0xff] }
 0x10d   :  { %v174_v8 = vpop.permute.xlu1 %173  ;;  %213 = vst.msk [vmem:[#allocation2 + $0x58] sm:$0xff] %vm201_vm1, %v176_v3  ;;  %v225_v10 = vld [vmem:[#allocation2 + $0x38] sm:$0xff]  ;;  %266 = vrot.lane.b32.xlu2 %v226_v7, %s998_s9  ;;  %v184_v11 = vpop.permute.xlu2 %183 }
 0x10e   :  { %212 = vst.msk [vmem:[#allocation2 + $0x50] sm:$0xff] %vm201_vm1, %v174_v8  ;;  %264 = vrot.lane.b32.xlu0 %v225_v10, %s998_s9  ;;  %262 = vrot.lane.b32.xlu1 %v224_v2, %s998_s9  ;;  %v230_v23 = vld [vmem:[#allocation2 + $0x60] sm:$0xff] }
 0x10f   :  { %217 = vst.msk [vmem:[#allocation2 + $0x78] sm:$0xff] %vm201_vm1, %v184_v11 }
 0x114   :  { %v182_v15 = vpop.permute.xlu0 %181  ;;  %v229_v16 = vld [vmem:[#allocation2 + $0x58] sm:$0xff] }
 0x115   :  { %v180_v20 = vpop.permute.xlu1 %179  ;;  %216 = vst.msk [vmem:[#allocation2 + $0x70] sm:$0xff] %vm201_vm1, %v182_v15  ;;  %v228_v21 = vld [vmem:[#allocation2 + $0x50] sm:$0xff]  ;;  %272 = vrot.lane.b32.xlu2 %v229_v16, %s998_s9 }
 0x116   :  { %215 = vst.msk [vmem:[#allocation2 + $0x68] sm:$0xff] %vm201_vm1, %v180_v20  ;;  %270 = vrot.lane.b32.xlu0 %v228_v21, %s998_s9  ;;  %268 = vrot.lane.b32.xlu1 %v227_v14, %s998_s9  ;;  %v233_v31 = vld [vmem:[#allocation2 + $0x78] sm:$0xff] }
 0x11c   :  { %v232_v24 = vld [vmem:[#allocation2 + $0x70] sm:$0xff] }
 0x11d   :  { %v231_v29 = vld [vmem:[#allocation2 + $0x68] sm:$0xff]  ;;  %278 = vrot.lane.b32.xlu2 %v232_v24, %s998_s9 }
 0x11e   :  { %276 = vrot.lane.b32.xlu0 %v231_v29, %s998_s9  ;;  %274 = vrot.lane.b32.xlu1 %v230_v23, %s998_s9 }
 0x126   :  { %280 = vrot.lane.b32.xlu1 %v233_v31, %s998_s9 }
 0x157   :  { %v255_v30 = vpop.permute.xlu2 %254 }
 0x158   :  { %v1281_v37 = vadd.f32 %v1126_v47, %v255_v30 }
 0x15a   :  { %334 = vrot.lane.b32.xlu1 %v1281_v37, %s996_s0 }
 0x15f   :  { %v261_v38 = vpop.permute.xlu2 %260 }
 0x160   :  { %v1286_v39 = vadd.f32 %v1148_v58, %v261_v38  ;;  %v253_v40 = vpop.permute.xlu0 %252 }
 0x161   :  { %v1289_v43 = vadd.f32 %v1152_v62, %v253_v40 }
 0x162   :  { %340 = vrot.lane.b32.xlu1 %v1286_v39, %s996_s0 }
 0x163   :  { %332 = vrot.lane.b32.xlu2 %v1289_v43, %s996_s0 }
 0x167   :  { %v267_v45 = vpop.permute.xlu2 %266 }
 0x168   :  { %v1296_v47 = vadd.f32 %v1172_v6, %v267_v45 }
 0x16a   :  { %346 = vrot.lane.b32.xlu1 %v1296_v47, %s996_s0 }
 0x16f   :  { %v273_v46 = vpop.permute.xlu2 %272 }
 0x170   :  { %v251_v58 = vpop.permute.xlu1 %250  ;;  %v1301_v48 = vadd.f32 %v1200_v19, %v273_v46 }
 0x171   :  { %v1304_v62 = vadd.f32 %v1130_v50, %v251_v58 }
 0x172   :  { %352 = vrot.lane.b32.xlu1 %v1301_v48, %s996_s0 }
 0x173   :  { %330 = vrot.lane.b32.xlu0 %v1304_v62, %s996_s0 }
 0x177   :  { %v279_v49 = vpop.permute.xlu2 %278 }
 0x178   :  { %v257_v6 = vpop.permute.xlu1 %256  ;;  %v1311_v51 = vadd.f32 %v1224_v27, %v279_v49  ;;  %v259_v54 = vpop.permute.xlu0 %258 }
 0x179   :  { %v1314_v55 = vadd.f32 %v1170_v5, %v257_v6  ;;  %v1317_v19 = vadd.f32 %v1146_v57, %v259_v54 }
 0x17a   :  { %358 = vrot.lane.b32.xlu1 %v1311_v51, %s996_s0 }
 0x17b   :  { %336 = vrot.lane.b32.xlu0 %v1314_v55, %s996_s0  ;;  %338 = vrot.lane.b32.xlu2 %v1317_v19, %s996_s0 }
 0x180   :  { %v263_v50 = vpop.permute.xlu1 %262  ;;  %v265_v59 = vpop.permute.xlu0 %264 }
 0x181   :  { %v1326_v27 = vadd.f32 %v1197_v18, %v263_v50  ;;  %v1329_v5 = vadd.f32 %v1174_v9, %v265_v59 }
 0x183   :  { %342 = vrot.lane.b32.xlu0 %v1326_v27, %s996_s0  ;;  %344 = vrot.lane.b32.xlu2 %v1329_v5, %s996_s0 }
 0x188   :  { %v269_v57 = vpop.permute.xlu1 %268  ;;  %v271_v60 = vpop.permute.xlu0 %270 }
 0x189   :  { %v1336_v61 = vadd.f32 %v1219_v25, %v269_v57  ;;  %v1339_v1 = vadd.f32 %v1203_v22, %v271_v60 }
 0x18b   :  { %348 = vrot.lane.b32.xlu0 %v1336_v61, %s996_s0  ;;  %350 = vrot.lane.b32.xlu2 %v1339_v1, %s996_s0 }
 0x190   :  { %v275_v9 = vpop.permute.xlu1 %274  ;;  %v277_v18 = vpop.permute.xlu0 %276 }
 0x191   :  { %v1346_v2 = vadd.f32 %v1240_v34, %v275_v9  ;;  %v1349_v3 = vadd.f32 %v1227_v28, %v277_v18 }
 0x193   :  { %354 = vrot.lane.b32.xlu0 %v1346_v2, %s996_s0  ;;  %356 = vrot.lane.b32.xlu2 %v1349_v3, %s996_s0 }
 0x198   :  { %v281_v22 = vpop.permute.xlu1 %280 }
 0x199   :  { %v1356_v25 = vadd.f32 %v1244_v36, %v281_v22 }
 0x19b   :  { %360 = vrot.lane.b32.xlu0 %v1356_v25, %s996_s0 }
 0x1bd   :  { %v333_v7 = vpop.permute.xlu2 %332 }
 0x1be   :  { %379 = vst.msk [vmem:[#allocation2 + $0x8] sm:$0xff] %vm201_vm1, %v333_v7 }
 0x1c5   :  { %v395_v34 = vld [vmem:[#allocation2 + $0x8] sm:$0xff] }
 0x1c6   :  { %428 = vrot.lane.b32.xlu1 %v395_v34, %s999_s10 }
 0x1cc   :  { %v335_v28 = vpop.permute.xlu1 %334 }
 0x1cd   :  { %380 = vst.msk [vmem:[#allocation2 + $0x10] sm:$0xff] %vm201_vm1, %v335_v28 }
 0x1d4   :  { %v341_v8 = vpop.permute.xlu1 %340  ;;  %v396_v10 = vld [vmem:[#allocation2 + $0x10] sm:$0xff] }
 0x1d5   :  { %383 = vst.msk [vmem:[#allocation2 + $0x28] sm:$0xff] %vm201_vm1, %v341_v8  ;;  %v339_v11 = vpop.permute.xlu2 %338  ;;  %430 = vrot.lane.b32.xlu0 %v396_v10, %s999_s10 }
 0x1d6   :  { %382 = vst.msk [vmem:[#allocation2 + $0x20] sm:$0xff] %vm201_vm1, %v339_v11 }
 0x1dc   :  { %v347_v36 = vpop.permute.xlu1 %346  ;;  %v399_v14 = vld [vmem:[#allocation2 + $0x28] sm:$0xff] }
 0x1dd   :  { %386 = vst.msk [vmem:[#allocation2 + $0x40] sm:$0xff] %vm201_vm1, %v347_v36  ;;  %v345_v15 = vpop.permute.xlu2 %344  ;;  %436 = vrot.lane.b32.xlu0 %v399_v14, %s999_s10  ;;  %v398_v16 = vld [vmem:[#allocation2 + $0x20] sm:$0xff] }
 0x1de   :  { %385 = vst.msk [vmem:[#allocation2 + $0x38] sm:$0xff] %vm201_vm1, %v345_v15  ;;  %434 = vrot.lane.b32.xlu1 %v398_v16, %s999_s10 }
 0x1e4   :  { %v353_v20 = vpop.permute.xlu1 %352  ;;  %v402_v21 = vld [vmem:[#allocation2 + $0x40] sm:$0xff] }
 0x1e5   :  { %389 = vst.msk [vmem:[#allocation2 + $0x58] sm:$0xff] %vm201_vm1, %v353_v20  ;;  %v351_v23 = vpop.permute.xlu2 %350  ;;  %v331_v24 = vpop.permute.xlu0 %330  ;;  %442 = vrot.lane.b32.xlu0 %v402_v21, %s999_s10  ;;  %v401_v29 = vld [vmem:[#allocation2 + $0x38] sm:$0xff] }
 0x1e6   :  { %388 = vst.msk [vmem:[#allocation2 + $0x50] sm:$0xff] %vm201_vm1, %v351_v23  ;;  %440 = vrot.lane.b32.xlu1 %v401_v29, %s999_s10 }
 0x1e7   :  { %378 = vst.msk [vmem:[#allocation2] sm:$0xff] %vm201_vm1, %v331_v24 }
 0x1ec   :  { %v359_v31 = vpop.permute.xlu1 %358  ;;  %v405_v30 = vld [vmem:[#allocation2 + $0x58] sm:$0xff] }
 0x1ed   :  { %392 = vst.msk [vmem:[#allocation2 + $0x70] sm:$0xff] %vm201_vm1, %v359_v31  ;;  %v357_v38 = vpop.permute.xlu2 %356  ;;  %v337_v40 = vpop.permute.xlu0 %336  ;;  %448 = vrot.lane.b32.xlu0 %v405_v30, %s999_s10  ;;  %v404_v45 = vld [vmem:[#allocation2 + $0x50] sm:$0xff] }
 0x1ee   :  { %391 = vst.msk [vmem:[#allocation2 + $0x68] sm:$0xff] %vm201_vm1, %v357_v38  ;;  %446 = vrot.lane.b32.xlu1 %v404_v45, %s999_s10  ;;  %v394_v46 = vld [vmem:[#allocation2] sm:$0xff] }
 0x1ef   :  { %381 = vst.msk [vmem:[#allocation2 + $0x18] sm:$0xff] %vm201_vm1, %v337_v40  ;;  %426 = vrot.lane.b32.xlu2 %v394_v46, %s999_s10 }
 0x1f4   :  { %v408_v58 = vld [vmem:[#allocation2 + $0x70] sm:$0xff] }
 0x1f5   :  { %v343_v49 = vpop.permute.xlu0 %342  ;;  %454 = vrot.lane.b32.xlu0 %v408_v58, %s999_s10  ;;  %v407_v6 = vld [vmem:[#allocation2 + $0x68] sm:$0xff] }
 0x1f6   :  { %384 = vst.msk [vmem:[#allocation2 + $0x30] sm:$0xff] %vm201_vm1, %v343_v49  ;;  %452 = vrot.lane.b32.xlu1 %v407_v6, %s999_s10  ;;  %v397_v54 = vld [vmem:[#allocation2 + $0x18] sm:$0xff] }
 0x1f7   :  { %432 = vrot.lane.b32.xlu2 %v397_v54, %s999_s10 }
 0x1fd   :  { %v349_v50 = vpop.permute.xlu0 %348  ;;  %v400_v59 = vld [vmem:[#allocation2 + $0x30] sm:$0xff] }
 0x1fe   :  { %387 = vst.msk [vmem:[#allocation2 + $0x48] sm:$0xff] %vm201_vm1, %v349_v50 }
 0x1ff   :  { %438 = vrot.lane.b32.xlu2 %v400_v59, %s999_s10 }
 0x205   :  { %v355_v57 = vpop.permute.xlu0 %354  ;;  %v403_v60 = vld [vmem:[#allocation2 + $0x48] sm:$0xff] }
 0x206   :  { %390 = vst.msk [vmem:[#allocation2 + $0x60] sm:$0xff] %vm201_vm1, %v355_v57 }
 0x207   :  { %444 = vrot.lane.b32.xlu2 %v403_v60, %s999_s10 }
 0x20d   :  { %v361_v9 = vpop.permute.xlu0 %360  ;;  %v406_v18 = vld [vmem:[#allocation2 + $0x60] sm:$0xff] }
 0x20e   :  { %393 = vst.msk [vmem:[#allocation2 + $0x78] sm:$0xff] %vm201_vm1, %v361_v9 }
 0x20f   :  { %450 = vrot.lane.b32.xlu2 %v406_v18, %s999_s10 }
 0x215   :  { %v409_v22 = vld [vmem:[#allocation2 + $0x78] sm:$0xff] }
 0x217   :  { %456 = vrot.lane.b32.xlu2 %v409_v22, %s999_s10 }
 0x238   :  { %v429_v7 = vpop.permute.xlu1 %428 }
 0x239   :  { %v1393_v34 = vadd.f32 %v429_v7, %v1289_v43 }
 0x23b   :  { %508 = vrot.lane.b32.xlu0 %v1393_v34, %s996_s0 }
 0x247   :  { %v431_v28 = vpop.permute.xlu0 %430 }
 0x248   :  { %v1398_v8 = vadd.f32 %v431_v28, %v1281_v37 }
 0x249   :  { %v427_v10 = vpop.permute.xlu2 %426 }
 0x24a   :  { %v1401_v11 = vadd.f32 %v427_v10, %v1304_v62  ;;  %510 = vrot.lane.b32.xlu2 %v1398_v8, %s996_s0 }
 0x24c   :  { %506 = vrot.lane.b32.xlu1 %v1401_v11, %s996_s0 }
 0x24f   :  { %v437_v36 = vpop.permute.xlu0 %436 }
 0x250   :  { %v435_v43 = vpop.permute.xlu1 %434  ;;  %v1408_v14 = vadd.f32 %v437_v36, %v1286_v39 }
 0x251   :  { %v1411_v15 = vadd.f32 %v435_v43, %v1317_v19  ;;  %v433_v37 = vpop.permute.xlu2 %432 }
 0x252   :  { %v1414_v16 = vadd.f32 %v433_v37, %v1314_v55  ;;  %516 = vrot.lane.b32.xlu2 %v1408_v14, %s996_s0 }
 0x253   :  { %514 = vrot.lane.b32.xlu0 %v1411_v15, %s996_s0 }
 0x254   :  { %512 = vrot.lane.b32.xlu1 %v1414_v16, %s996_s0 }
 0x257   :  { %v443_v62 = vpop.permute.xlu0 %442 }
 0x258   :  { %v441_v20 = vpop.permute.xlu1 %440  ;;  %v1423_v39 = vadd.f32 %v443_v62, %v1296_v47 }
 0x259   :  { %v1426_v19 = vadd.f32 %v441_v20, %v1329_v5  ;;  %v439_v21 = vpop.permute.xlu2 %438 }
 0x25a   :  { %v1429_v55 = vadd.f32 %v439_v21, %v1326_v27  ;;  %522 = vrot.lane.b32.xlu2 %v1423_v39, %s996_s0 }
 0x25b   :  { %520 = vrot.lane.b32.xlu0 %v1426_v19, %s996_s0 }
 0x25c   :  { %518 = vrot.lane.b32.xlu1 %v1429_v55, %s996_s0 }
 0x25f   :  { %v449_v23 = vpop.permute.xlu0 %448 }
 0x260   :  { %v447_v24 = vpop.permute.xlu1 %446  ;;  %v1438_v47 = vadd.f32 %v449_v23, %v1301_v48 }
 0x261   :  { %v1441_v5 = vadd.f32 %v447_v24, %v1339_v1  ;;  %v445_v29 = vpop.permute.xlu2 %444 }
 0x262   :  { %v1444_v27 = vadd.f32 %v445_v29, %v1336_v61  ;;  %528 = vrot.lane.b32.xlu2 %v1438_v47, %s996_s0 }
 0x263   :  { %526 = vrot.lane.b32.xlu0 %v1441_v5, %s996_s0 }
 0x264   :  { %524 = vrot.lane.b32.xlu1 %v1444_v27, %s996_s0 }
 0x267   :  { %v455_v31 = vpop.permute.xlu0 %454 }
 0x268   :  { %v453_v30 = vpop.permute.xlu1 %452  ;;  %v1453_v48 = vadd.f32 %v455_v31, %v1311_v51 }
 0x269   :  { %v1456_v1 = vadd.f32 %v453_v30, %v1349_v3  ;;  %v451_v38 = vpop.permute.xlu2 %450 }
 0x26a   :  { %v1459_v61 = vadd.f32 %v451_v38, %v1346_v2  ;;  %534 = vrot.lane.b32.xlu2 %v1453_v48, %s996_s0 }
 0x26b   :  { %532 = vrot.lane.b32.xlu0 %v1456_v1, %s996_s0 }
 0x26c   :  { %530 = vrot.lane.b32.xlu1 %v1459_v61, %s996_s0 }
 0x271   :  { %v457_v40 = vpop.permute.xlu2 %456 }
 0x272   :  { %v1468_v51 = vadd.f32 %v457_v40, %v1356_v25 }
 0x274   :  { %536 = vrot.lane.b32.xlu1 %v1468_v51, %s996_s0 }
 0x2a4   :  { %v511_v3 = vpop.permute.xlu2 %510 }
 0x2a5   :  { %556 = vst.msk [vmem:[#allocation2 + $0x10] sm:$0xff] %vm201_vm1, %v511_v3 }
 0x2ac   :  { %v517_v2 = vpop.permute.xlu2 %516  ;;  %v572_v45 = vld [vmem:[#allocation2 + $0x10] sm:$0xff] }
 0x2ad   :  { %559 = vst.msk [vmem:[#allocation2 + $0x28] sm:$0xff] %vm201_vm1, %v517_v2  ;;  %v509_v46 = vpop.permute.xlu0 %508  ;;  %606 = vrot.lane.b32.xlu1 %v572_v45, %s1000_s11 }
 0x2ae   :  { %555 = vst.msk [vmem:[#allocation2 + $0x8] sm:$0xff] %vm201_vm1, %v509_v46 }
 0x2b4   :  { %v523_v58 = vpop.permute.xlu2 %522  ;;  %v575_v49 = vld [vmem:[#allocation2 + $0x28] sm:$0xff] }
 0x2b5   :  { %562 = vst.msk [vmem:[#allocation2 + $0x40] sm:$0xff] %vm201_vm1, %v523_v58  ;;  %612 = vrot.lane.b32.xlu1 %v575_v49, %s1000_s11  ;;  %v571_v25 = vld [vmem:[#allocation2 + $0x8] sm:$0xff] }
 0x2b6   :  { %604 = vrot.lane.b32.xlu2 %v571_v25, %s1000_s11 }
 0x2bc   :  { %v529_v6 = vpop.permute.xlu2 %528  ;;  %v578_v54 = vld [vmem:[#allocation2 + $0x40] sm:$0xff] }
 0x2bd   :  { %565 = vst.msk [vmem:[#allocation2 + $0x58] sm:$0xff] %vm201_vm1, %v529_v6  ;;  %618 = vrot.lane.b32.xlu1 %v578_v54, %s1000_s11 }
 0x2be   :  { %v507_v50 = vpop.permute.xlu1 %506 }
 0x2bf   :  { %554 = vst.msk [vmem:[#allocation2] sm:$0xff] %vm201_vm1, %v507_v50 }
 0x2c4   :  { %v535_v59 = vpop.permute.xlu2 %534  ;;  %v581_v57 = vld [vmem:[#allocation2 + $0x58] sm:$0xff] }
 0x2c5   :  { %568 = vst.msk [vmem:[#allocation2 + $0x70] sm:$0xff] %vm201_vm1, %v535_v59  ;;  %v515_v60 = vpop.permute.xlu0 %514  ;;  %624 = vrot.lane.b32.xlu1 %v581_v57, %s1000_s11 }
 0x2c6   :  { %v513_v9 = vpop.permute.xlu1 %512  ;;  %558 = vst.msk [vmem:[#allocation2 + $0x20] sm:$0xff] %vm201_vm1, %v515_v60  ;;  %v570_v18 = vld [vmem:[#allocation2] sm:$0xff] }
 0x2c7   :  { %557 = vst.msk [vmem:[#allocation2 + $0x18] sm:$0xff] %vm201_vm1, %v513_v9  ;;  %602 = vrot.lane.b32.xlu0 %v570_v18, %s1000_s11 }
 0x2cc   :  { %v584_v22 = vld [vmem:[#allocation2 + $0x70] sm:$0xff] }
 0x2cd   :  { %v521_v7 = vpop.permute.xlu0 %520  ;;  %630 = vrot.lane.b32.xlu1 %v584_v22, %s1000_s11  ;;  %v574_v28 = vld [vmem:[#allocation2 + $0x20] sm:$0xff] }
 0x2ce   :  { %v519_v10 = vpop.permute.xlu1 %518  ;;  %561 = vst.msk [vmem:[#allocation2 + $0x38] sm:$0xff] %vm201_vm1, %v521_v7  ;;  %v573_v36 = vld [vmem:[#allocation2 + $0x18] sm:$0xff]  ;;  %610 = vrot.lane.b32.xlu2 %v574_v28, %s1000_s11 }
 0x2cf   :  { %560 = vst.msk [vmem:[#allocation2 + $0x30] sm:$0xff] %vm201_vm1, %v519_v10  ;;  %608 = vrot.lane.b32.xlu0 %v573_v36, %s1000_s11 }
 0x2d5   :  { %v527_v43 = vpop.permute.xlu0 %526  ;;  %v577_v37 = vld [vmem:[#allocation2 + $0x38] sm:$0xff] }
 0x2d6   :  { %v525_v62 = vpop.permute.xlu1 %524  ;;  %564 = vst.msk [vmem:[#allocation2 + $0x50] sm:$0xff] %vm201_vm1, %v527_v43  ;;  %v576_v20 = vld [vmem:[#allocation2 + $0x30] sm:$0xff]  ;;  %616 = vrot.lane.b32.xlu2 %v577_v37, %s1000_s11 }
 0x2d7   :  { %563 = vst.msk [vmem:[#allocation2 + $0x48] sm:$0xff] %vm201_vm1, %v525_v62  ;;  %614 = vrot.lane.b32.xlu0 %v576_v20, %s1000_s11 }
 0x2dd   :  { %v533_v21 = vpop.permute.xlu0 %532  ;;  %v580_v23 = vld [vmem:[#allocation2 + $0x50] sm:$0xff] }
 0x2de   :  { %v531_v24 = vpop.permute.xlu1 %530  ;;  %567 = vst.msk [vmem:[#allocation2 + $0x68] sm:$0xff] %vm201_vm1, %v533_v21  ;;  %v579_v29 = vld [vmem:[#allocation2 + $0x48] sm:$0xff]  ;;  %622 = vrot.lane.b32.xlu2 %v580_v23, %s1000_s11 }
 0x2df   :  { %566 = vst.msk [vmem:[#allocation2 + $0x60] sm:$0xff] %vm201_vm1, %v531_v24  ;;  %620 = vrot.lane.b32.xlu0 %v579_v29, %s1000_s11 }
 0x2e5   :  { %v583_v31 = vld [vmem:[#allocation2 + $0x68] sm:$0xff] }
 0x2e6   :  { %v537_v30 = vpop.permute.xlu1 %536  ;;  %v582_v38 = vld [vmem:[#allocation2 + $0x60] sm:$0xff]  ;;  %628 = vrot.lane.b32.xlu2 %v583_v31, %s1000_s11 }
 0x2e7   :  { %569 = vst.msk [vmem:[#allocation2 + $0x78] sm:$0xff] %vm201_vm1, %v537_v30  ;;  %626 = vrot.lane.b32.xlu0 %v582_v38, %s1000_s11 }
 0x2ee   :  { %v585_v40 = vld [vmem:[#allocation2 + $0x78] sm:$0xff] }
 0x2ef   :  { %632 = vrot.lane.b32.xlu0 %v585_v40, %s1000_s11 }
 0x310   :  { %v605_v3 = vpop.permute.xlu2 %604 }
 0x311   :  { %v1505_v2 = vadd.f32 %v605_v3, %v1393_v34 }
 0x313   :  { %684 = vrot.lane.b32.xlu1 %v1505_v2, %s996_s0 }
 0x31f   :  { %v607_v45 = vpop.permute.xlu1 %606 }
 0x320   :  { %v1510_v46 = vadd.f32 %v607_v45, %v1398_v8 }
 0x322   :  { %686 = vrot.lane.b32.xlu0 %v1510_v46, %s996_s0 }
 0x327   :  { %v613_v58 = vpop.permute.xlu1 %612 }
 0x328   :  { %v1515_v49 = vadd.f32 %v613_v58, %v1408_v14  ;;  %v611_v25 = vpop.permute.xlu2 %610 }
 0x329   :  { %v1518_v6 = vadd.f32 %v611_v25, %v1411_v15 }
 0x32a   :  { %692 = vrot.lane.b32.xlu0 %v1515_v49, %s996_s0 }
 0x32b   :  { %690 = vrot.lane.b32.xlu1 %v1518_v6, %s996_s0 }
 0x32f   :  { %v619_v34 = vpop.permute.xlu1 %618 }
 0x330   :  { %v1525_v8 = vadd.f32 %v619_v34, %v1423_v39  ;;  %v617_v54 = vpop.permute.xlu2 %616 }
 0x331   :  { %v1528_v50 = vadd.f32 %v617_v54, %v1426_v19 }
 0x332   :  { %698 = vrot.lane.b32.xlu0 %v1525_v8, %s996_s0 }
 0x333   :  { %696 = vrot.lane.b32.xlu1 %v1528_v50, %s996_s0 }
 0x337   :  { %v625_v14 = vpop.permute.xlu1 %624 }
 0x338   :  { %v1535_v15 = vadd.f32 %v625_v14, %v1438_v47  ;;  %v623_v59 = vpop.permute.xlu2 %622 }
 0x339   :  { %v1538_v57 = vadd.f32 %v623_v59, %v1441_v5  ;;  %v603_v39 = vpop.permute.xlu0 %602 }
 0x33a   :  { %v1541_v60 = vadd.f32 %v603_v39, %v1401_v11  ;;  %704 = vrot.lane.b32.xlu0 %v1535_v15, %s996_s0 }
 0x33b   :  { %702 = vrot.lane.b32.xlu1 %v1538_v57, %s996_s0 }
 0x33c   :  { %682 = vrot.lane.b32.xlu2 %v1541_v60, %s996_s0 }
 0x33f   :  { %v631_v19 = vpop.permute.xlu1 %630 }
 0x340   :  { %v1550_v47 = vadd.f32 %v631_v19, %v1453_v48  ;;  %v629_v9 = vpop.permute.xlu2 %628 }
 0x341   :  { %v1553_v5 = vadd.f32 %v629_v9, %v1456_v1  ;;  %v609_v18 = vpop.permute.xlu0 %608 }
 0x342   :  { %v1556_v11 = vadd.f32 %v609_v18, %v1414_v16  ;;  %710 = vrot.lane.b32.xlu0 %v1550_v47, %s996_s0 }
 0x343   :  { %708 = vrot.lane.b32.xlu1 %v1553_v5, %s996_s0 }
 0x344   :  { %688 = vrot.lane.b32.xlu2 %v1556_v11, %s996_s0 }
 0x349   :  { %v615_v22 = vpop.permute.xlu0 %614 }
 0x34a   :  { %v1565_v48 = vadd.f32 %v615_v22, %v1429_v55 }
 0x34c   :  { %694 = vrot.lane.b32.xlu2 %v1565_v48, %s996_s0 }
 0x351   :  { %v621_v1 = vpop.permute.xlu0 %620 }
 0x352   :  { %v1570_v16 = vadd.f32 %v621_v1, %v1444_v27 }
 0x354   :  { %700 = vrot.lane.b32.xlu2 %v1570_v16, %s996_s0 }
 0x359   :  { %v627_v7 = vpop.permute.xlu0 %626 }
 0x35a   :  { %v1575_v28 = vadd.f32 %v627_v7, %v1459_v61 }
 0x35c   :  { %706 = vrot.lane.b32.xlu2 %v1575_v28, %s996_s0 }
 0x361   :  { %v633_v10 = vpop.permute.xlu0 %632 }
 0x362   :  { %v1580_v55 = vadd.f32 %v633_v10, %v1468_v51 }
 0x364   :  { %712 = vrot.lane.b32.xlu2 %v1580_v55, %s996_s0 }
 0x385   :  { %v685_v36 = vpop.permute.xlu1 %684 }
 0x386   :  { %731 = vst.msk [vmem:[#allocation2 + $0x8] sm:$0xff] %vm201_vm1, %v685_v36 }
 0x38d   :  { %v747_v27 = vld [vmem:[#allocation2 + $0x8] sm:$0xff] }
 0x38e   :  { %780 = vrot.lane.b32.xlu0 %v747_v27, %s1001_s12 }
 0x394   :  { %v687_v43 = vpop.permute.xlu0 %686 }
 0x395   :  { %732 = vst.msk [vmem:[#allocation2 + $0x10] sm:$0xff] %vm201_vm1, %v687_v43 }
 0x396   :  { %v683_v61 = vpop.permute.xlu2 %682 }
 0x397   :  { %730 = vst.msk [vmem:[#allocation2] sm:$0xff] %vm201_vm1, %v683_v61 }
 0x39c   :  { %v693_v37 = vpop.permute.xlu0 %692  ;;  %v748_v62 = vld [vmem:[#allocation2 + $0x10] sm:$0xff] }
 0x39d   :  { %v691_v51 = vpop.permute.xlu1 %690  ;;  %735 = vst.msk [vmem:[#allocation2 + $0x28] sm:$0xff] %vm201_vm1, %v693_v37  ;;  %782 = vrot.lane.b32.xlu2 %v748_v62, %s1001_s12 }
 0x39e   :  { %734 = vst.msk [vmem:[#allocation2 + $0x20] sm:$0xff] %vm201_vm1, %v691_v51  ;;  %v689_v20 = vpop.permute.xlu2 %688  ;;  %v746_v21 = vld [vmem:[#allocation2] sm:$0xff] }
 0x39f   :  { %733 = vst.msk [vmem:[#allocation2 + $0x18] sm:$0xff] %vm201_vm1, %v689_v20  ;;  %778 = vrot.lane.b32.xlu1 %v746_v21, %s1001_s12 }
 0x3a4   :  { %v699_v23 = vpop.permute.xlu0 %698  ;;  %v751_v24 = vld [vmem:[#allocation2 + $0x28] sm:$0xff] }
 0x3a5   :  { %v697_v29 = vpop.permute.xlu1 %696  ;;  %738 = vst.msk [vmem:[#allocation2 + $0x40] sm:$0xff] %vm201_vm1, %v699_v23  ;;  %v750_v31 = vld [vmem:[#allocation2 + $0x20] sm:$0xff]  ;;  %788 = vrot.lane.b32.xlu2 %v751_v24, %s1001_s12 }
 0x3a6   :  { %737 = vst.msk [vmem:[#allocation2 + $0x38] sm:$0xff] %vm201_vm1, %v697_v29  ;;  %v695_v30 = vpop.permute.xlu2 %694  ;;  %786 = vrot.lane.b32.xlu0 %v750_v31, %s1001_s12  ;;  %v749_v38 = vld [vmem:[#allocation2 + $0x18] sm:$0xff] }
 0x3a7   :  { %736 = vst.msk [vmem:[#allocation2 + $0x30] sm:$0xff] %vm201_vm1, %v695_v30  ;;  %784 = vrot.lane.b32.xlu1 %v749_v38, %s1001_s12 }
 0x3ac   :  { %v705_v40 = vpop.permute.xlu0 %704  ;;  %v754_v3 = vld [vmem:[#allocation2 + $0x40] sm:$0xff] }
 0x3ad   :  { %v703_v45 = vpop.permute.xlu1 %702  ;;  %741 = vst.msk [vmem:[#allocation2 + $0x58] sm:$0xff] %vm201_vm1, %v705_v40  ;;  %v753_v58 = vld [vmem:[#allocation2 + $0x38] sm:$0xff]  ;;  %794 = vrot.lane.b32.xlu2 %v754_v3, %s1001_s12 }
 0x3ae   :  { %740 = vst.msk [vmem:[#allocation2 + $0x50] sm:$0xff] %vm201_vm1, %v703_v45  ;;  %v701_v25 = vpop.permute.xlu2 %700  ;;  %792 = vrot.lane.b32.xlu0 %v753_v58, %s1001_s12  ;;  %v752_v34 = vld [vmem:[#allocation2 + $0x30] sm:$0xff] }
 0x3af   :  { %739 = vst.msk [vmem:[#allocation2 + $0x48] sm:$0xff] %vm201_vm1, %v701_v25  ;;  %790 = vrot.lane.b32.xlu1 %v752_v34, %s1001_s12 }
 0x3b4   :  { %v711_v54 = vpop.permute.xlu0 %710  ;;  %v757_v14 = vld [vmem:[#allocation2 + $0x58] sm:$0xff] }
 0x3b5   :  { %v709_v59 = vpop.permute.xlu1 %708  ;;  %744 = vst.msk [vmem:[#allocation2 + $0x70] sm:$0xff] %vm201_vm1, %v711_v54  ;;  %v756_v39 = vld [vmem:[#allocation2 + $0x50] sm:$0xff]  ;;  %800 = vrot.lane.b32.xlu2 %v757_v14, %s1001_s12 }
 0x3b6   :  { %743 = vst.msk [vmem:[#allocation2 + $0x68] sm:$0xff] %vm201_vm1, %v709_v59  ;;  %v707_v19 = vpop.permute.xlu2 %706  ;;  %798 = vrot.lane.b32.xlu0 %v756_v39, %s1001_s12  ;;  %v755_v9 = vld [vmem:[#allocation2 + $0x48] sm:$0xff] }
 0x3b7   :  { %742 = vst.msk [vmem:[#allocation2 + $0x60] sm:$0xff] %vm201_vm1, %v707_v19  ;;  %796 = vrot.lane.b32.xlu1 %v755_v9, %s1001_s12 }
 0x3bc   :  { %v760_v18 = vld [vmem:[#allocation2 + $0x70] sm:$0xff] }
 0x3bd   :  { %v759_v22 = vld [vmem:[#allocation2 + $0x68] sm:$0xff]  ;;  %806 = vrot.lane.b32.xlu2 %v760_v18, %s1001_s12 }
 0x3be   :  { %v713_v1 = vpop.permute.xlu2 %712  ;;  %804 = vrot.lane.b32.xlu0 %v759_v22, %s1001_s12  ;;  %v758_v7 = vld [vmem:[#allocation2 + $0x60] sm:$0xff] }
 0x3bf   :  { %745 = vst.msk [vmem:[#allocation2 + $0x78] sm:$0xff] %vm201_vm1, %v713_v1  ;;  %802 = vrot.lane.b32.xlu1 %v758_v7, %s1001_s12 }
 0x3c6   :  { %v761_v10 = vld [vmem:[#allocation2 + $0x78] sm:$0xff] }
 0x3c7   :  { %808 = vrot.lane.b32.xlu1 %v761_v10, %s1001_s12 }
 0x3f7   :  { %v783_v36 = vpop.permute.xlu2 %782 }
 0x3f8   :  { %v828_v27 = vadd.f32 %v783_v36, %v1510_v46 }
 0x3fa   :  { %964 = vlog2.f32 %v828_v27 }
 0x3ff   :  { %v789_v43 = vpop.permute.xlu2 %788 }
 0x400   :  { %v965_v61 = vpop.eup %964  ;;  %v831_v37 = vadd.f32 %v789_v43, %v1515_v49  ;;  %v781_v62 = vpop.permute.xlu0 %780 }
 0x401   :  { %v847_v51 = vmul.f32 0.6931472, %v965_v61  ;;  %v827_v20 = vadd.f32 %v781_v62, %v1505_v2 }
 0x402   :  { %966 = vlog2.f32 %v831_v37 }
 0x403   :  { %v876_v21 = vadd.f32 %v847_v51, %v1111_v33  ;;  %968 = vlog2.f32 %v827_v20 }
 0x405   :  { %v892_v23 = vmul.f32 0.25, %v876_v21 }
 0x407   :  { %908 = vst.msk [vmem:[%s1713_s1 + $0x10] sm:$0xff] %vm24_vm0, %v892_v23  ;;  %v795_v46 = vpop.permute.xlu2 %794 }
 0x408   :  { %v967_v24 = vpop.eup %966  ;;  %v834_v29 = vadd.f32 %v795_v46, %v1525_v8 }
 0x409   :  { %v969_v31 = vpop.eup %968  ;;  %v853_v49 = vmul.f32 0.6931472, %v967_v24 }
 0x40a   :  { %v845_v30 = vmul.f32 0.6931472, %v969_v31  ;;  %970 = vlog2.f32 %v834_v29 }
 0x40b   :  { %v879_v2 = vadd.f32 %v853_v49, %v1118_v41 }
 0x40c   :  { %v875_v38 = vadd.f32 %v845_v30, %v1123_v44 }
 0x40d   :  { %v895_v33 = vmul.f32 0.25, %v879_v2 }
 0x40e   :  { %v891_v40 = vmul.f32 0.25, %v875_v38 }
 0x40f   :  { %911 = vst.msk [vmem:[%s1713_s1 + $0x28] sm:$0xff] %vm24_vm0, %v895_v33  ;;  %v801_v3 = vpop.permute.xlu2 %800 }
 0x410   :  { %v971_v45 = vpop.eup %970  ;;  %907 = vst.msk [vmem:[%s1713_s1 + $0x8] sm:$0xff] %vm24_vm0, %v891_v40  ;;  %v837_v8 = vadd.f32 %v801_v3, %v1535_v15 }
 0x411   :  { %v859_v58 = vmul.f32 0.6931472, %v971_v45  ;;  %v779_v41 = vpop.permute.xlu1 %778 }
 0x412   :  { %v826_v44 = vadd.f32 %v779_v41, %v1541_v60  ;;  %972 = vlog2.f32 %v837_v8 }
 0x413   :  { %v882_v25 = vadd.f32 %v859_v58, %v1136_v52 }
 0x414   :  { %974 = vlog2.f32 %v826_v44 }
 0x415   :  { %v898_v34 = vmul.f32 0.25, %v882_v25 }
 0x417   :  { %914 = vst.msk [vmem:[%s1713_s1 + $0x40] sm:$0xff] %vm24_vm0, %v898_v34  ;;  %v807_v54 = vpop.permute.xlu2 %806 }
 0x418   :  { %v973_v14 = vpop.eup %972  ;;  %v840_v59 = vadd.f32 %v807_v54, %v1550_v47  ;;  %v787_v39 = vpop.permute.xlu0 %786 }
 0x419   :  { %v865_v15 = vmul.f32 0.6931472, %v973_v14  ;;  %v785_v19 = vpop.permute.xlu1 %784  ;;  %v830_v9 = vadd.f32 %v787_v39, %v1518_v6 }
 0x41a   :  { %v975_v60 = vpop.eup %974  ;;  %v829_v18 = vadd.f32 %v785_v19, %v1556_v11  ;;  %976 = vlog2.f32 %v840_v59 }
 0x41b   :  { %v843_v52 = vmul.f32 0.6931472, %v975_v60  ;;  %v885_v22 = vadd.f32 %v865_v15, %v1160_v63  ;;  %978 = vlog2.f32 %v830_v9 }
 0x41c   :  { %980 = vlog2.f32 %v829_v18 }
 0x41d   :  { %v874_v1 = vadd.f32 %v843_v52, %v1114_v35  ;;  %v901_v7 = vmul.f32 0.25, %v885_v22 }
 0x41f   :  { %v890_v10 = vmul.f32 0.25, %v874_v1  ;;  %917 = vst.msk [vmem:[%s1713_s1 + $0x58] sm:$0xff] %vm24_vm0, %v901_v7 }
 0x420   :  { %v977_v47 = vpop.eup %976  ;;  %v793_v6 = vpop.permute.xlu0 %792 }
 0x421   :  { %v979_v36 = vpop.eup %978  ;;  %906 = vst.msk [vmem:[%s1713_s1] sm:$0xff] %vm24_vm0, %v890_v10  ;;  %v871_v63 = vmul.f32 0.6931472, %v977_v47  ;;  %v791_v11 = vpop.permute.xlu1 %790  ;;  %v833_v27 = vadd.f32 %v793_v6, %v1528_v50 }
 0x422   :  { %v981_v35 = vpop.eup %980  ;;  %v851_v43 = vmul.f32 0.6931472, %v979_v36  ;;  %v832_v61 = vadd.f32 %v791_v11, %v1565_v48 }
 0x423   :  { %v849_v37 = vmul.f32 0.6931472, %v981_v35  ;;  %v888_v62 = vadd.f32 %v871_v63, %v1185_v12  ;;  %982 = vlog2.f32 %v833_v27 }
 0x424   :  { %v878_v51 = vadd.f32 %v851_v43, %v1109_v32  ;;  %984 = vlog2.f32 %v832_v61 }
 0x425   :  { %v877_v20 = vadd.f32 %v849_v37, %v1120_v42  ;;  %v904_v21 = vmul.f32 0.25, %v888_v62 }
 0x426   :  { %v894_v23 = vmul.f32 0.25, %v878_v51 }
 0x427   :  { %v893_v46 = vmul.f32 0.25, %v877_v20  ;;  %920 = vst.msk [vmem:[%s1713_s1 + $0x70] sm:$0xff] %vm24_vm0, %v904_v21 }
 0x428   :  { %910 = vst.msk [vmem:[%s1713_s1 + $0x20] sm:$0xff] %vm24_vm0, %v894_v23  ;;  %v799_v12 = vpop.permute.xlu0 %798 }
 0x429   :  { %v983_v50 = vpop.eup %982  ;;  %909 = vst.msk [vmem:[%s1713_s1 + $0x18] sm:$0xff] %vm24_vm0, %v893_v46  ;;  %v797_v32 = vpop.permute.xlu1 %796  ;;  %v836_v42 = vadd.f32 %v799_v12, %v1538_v57 }
 0x42a   :  { %v985_v48 = vpop.eup %984  ;;  %v857_v24 = vmul.f32 0.6931472, %v983_v50  ;;  %v835_v29 = vadd.f32 %v797_v32, %v1570_v16 }
 0x42b   :  { %v855_v31 = vmul.f32 0.6931472, %v985_v48  ;;  %986 = vlog2.f32 %v836_v42 }
 0x42c   :  { %v881_v49 = vadd.f32 %v857_v24, %v1138_v53  ;;  %988 = vlog2.f32 %v835_v29 }
 0x42d   :  { %v880_v30 = vadd.f32 %v855_v31, %v1144_v56 }
 0x42e   :  { %v897_v2 = vmul.f32 0.25, %v881_v49 }
 0x42f   :  { %v896_v38 = vmul.f32 0.25, %v880_v30 }
 0x430   :  { %913 = vst.msk [vmem:[%s1713_s1 + $0x38] sm:$0xff] %vm24_vm0, %v897_v2  ;;  %v805_v33 = vpop.permute.xlu0 %804 }
 0x431   :  { %v987_v57 = vpop.eup %986  ;;  %912 = vst.msk [vmem:[%s1713_s1 + $0x30] sm:$0xff] %vm24_vm0, %v896_v38  ;;  %v803_v16 = vpop.permute.xlu1 %802  ;;  %v839_v53 = vadd.f32 %v805_v33, %v1553_v5 }
 0x432   :  { %v989_v40 = vpop.eup %988  ;;  %v863_v3 = vmul.f32 0.6931472, %v987_v57  ;;  %v838_v56 = vadd.f32 %v803_v16, %v1575_v28 }
 0x433   :  { %v861_v45 = vmul.f32 0.6931472, %v989_v40  ;;  %990 = vlog2.f32 %v839_v53 }
 0x434   :  { %v884_v8 = vadd.f32 %v863_v3, %v1162_v0  ;;  %992 = vlog2.f32 %v838_v56 }
 0x435   :  { %v883_v58 = vadd.f32 %v861_v45, %v1168_v4 }
 0x436   :  { %v900_v41 = vmul.f32 0.25, %v884_v8 }
 0x437   :  { %v899_v44 = vmul.f32 0.25, %v883_v58 }
 0x438   :  { %916 = vst.msk [vmem:[%s1713_s1 + $0x50] sm:$0xff] %vm24_vm0, %v900_v41 }
 0x439   :  { %v991_v25 = vpop.eup %990  ;;  %915 = vst.msk [vmem:[%s1713_s1 + $0x48] sm:$0xff] %vm24_vm0, %v899_v44  ;;  %v809_v5 = vpop.permute.xlu1 %808 }
 0x43a   :  { %v993_v28 = vpop.eup %992  ;;  %v869_v34 = vmul.f32 0.6931472, %v991_v25  ;;  %v841_v0 = vadd.f32 %v809_v5, %v1580_v55 }
 0x43b   :  { %v867_v54 = vmul.f32 0.6931472, %v993_v28 }
 0x43c   :  { %v887_v4 = vadd.f32 %v869_v34, %v1187_v13  ;;  %994 = vlog2.f32 %v841_v0 }
 0x43d   :  { %v886_v14 = vadd.f32 %v867_v54, %v1194_v17 }
 0x43e   :  { %v903_v59 = vmul.f32 0.25, %v887_v4 }
 0x43f   :  { %v902_v39 = vmul.f32 0.25, %v886_v14 }
 0x440   :  { %919 = vst.msk [vmem:[%s1713_s1 + $0x68] sm:$0xff] %vm24_vm0, %v903_v59 }
 0x441   :  { %918 = vst.msk [vmem:[%s1713_s1 + $0x60] sm:$0xff] %vm24_vm0, %v902_v39 }
 0x442   :  { %v995_v15 = vpop.eup %994 }
 0x443   :  { %v873_v55 = vmul.f32 0.6931472, %v995_v15 }
 0x445   :  { %v889_v19 = vadd.f32 %v873_v55, %v1221_v26 }
 0x447   :  { %v905_v13 = vmul.f32 0.25, %v889_v19 }
 0x449   :  { %921 = vst.msk [vmem:[%s1713_s1 + $0x78] sm:$0xff] %vm24_vm0, %v905_v13 }

</bundles_post_ra>
